<compile_context>
chip_gen: v5e
topology: v5e:2x2
jax: 0.10.0
libtpu: 0.0.40
codegen_flags: <defaults>
</compile_context>

<pallas_src>
import jax
import jax.numpy as jnp
from jax.experimental import pallas as pl
from jax.experimental.pallas import tpu as pltpu


# --------------------------- per-chip tiling budget ------------------------ #
def _tpu_tiling_budget():
    """Return (VMEM byte budget for double-buffered in+out blocks, vmem_limit_bytes|None)."""
    try:
        kind = jax.devices()[0].device_kind.lower()
    except Exception:
        kind = ""
    if "v2" in kind or "v3" in kind:
        # 16 MiB physical VMEM: stay well inside the default scoped limit.
        return 6 * 2**20, None
    if "v5" in kind:
        # v5e: ~2-3 MiB input blocks (~10 MiB double-buffered in+out); raise
        # the 16 MiB scoped default a little for headroom (128 MiB physical).
        return 10 * 2**20, 32 * 2**20
    # v4 / v6e / v7x / unknown: larger blocks -- at v7x's 3.2 TB/s the ~0.35 us
    # per-step overhead is a 25-35% tax on 2 MiB blocks, so target ~8 MiB input
    # blocks.  48 MiB scoped limit still leaves headroom on v7x (64 MiB per TC).
    return 24 * 2**20, 48 * 2**20


def _row_tile(r_rows, w, itemsize, budget_bytes):
    """Sublane-aligned row-tile size derived from a VMEM byte budget."""
    lane = 128
    # VMEM bytes per tile row: double-buffered input (2W cols) + output (W cols)
    # blocks, including lane padding (dominant when W < 128).
    pad_in = pl.cdiv(2 * w, lane) * lane
    pad_out = pl.cdiv(w, lane) * lane
    per_row = 2 * (pad_in + pad_out) * itemsize
    tr = budget_bytes // max(per_row, 1)
    # Keep >= ~4 grid steps when possible so v7x's two TensorCores both get
    # work and DMA/compute overlap exists; negligible cost on 1-TC chips.
    tr = min(tr, ((pl.cdiv(r_rows, 4) + 7) // 8) * 8)
    tr = max(8, (tr // 8) * 8)  # sublane-aligned, never below 8
    return tr


# ------------------------------ Pallas kernels ----------------------------- #
def _avgpool_split_kernel(a_ref, b_ref, o_ref):
    # Fast path (W % 128 == 0): a_ref / b_ref / o_ref are (tr, W), all lane-dense.
    a = a_ref[...].astype(jnp.float32)
    b = b_ref[...].astype(jnp.float32)
    o_ref[...] = ((a + b) * 0.5).astype(o_ref.dtype)


def _avgpool_rowpair_kernel(x_ref, o_ref):
    # General path: x_ref (tr, 2W), o_ref (tr, W).  Direct ref slice loads --
    # no full-width tile temporary is materialized.
    w = o_ref.shape[-1]
    a = x_ref[:, :w].astype(jnp.float32)
    b = x_ref[:, pl.ds(w, w)].astype(jnp.float32)
    o_ref[...] = ((a + b) * 0.5).astype(o_ref.dtype)


def _avgpool_pallas(x2, w):
    """x2: (R, 2*w) row-pair view  ->  (R, w) pooled rows."""
    R = x2.shape[0]
    itemsize = jnp.dtype(x2.dtype).itemsize

    budget, vmem_limit = _tpu_tiling_budget()
    tr = _row_tile(R, w, itemsize, budget)
    grid = (pl.cdiv(R, tr),)

    compiler_params = pltpu.CompilerParams(
        dimension_semantics=("parallel",),  # shard row tiles across TCs on v7x
        vmem_limit_bytes=vmem_limit,
    )
    out_shape = jax.ShapeDtypeStruct((R, w), x2.dtype)

    if w % 128 == 0:
        # Even/odd split done by the DMA: two input blocks of the same array,
        # one at column-block 0 (even rows) and one at column-block 1 (odd rows).
        return pl.pallas_call(
            _avgpool_split_kernel,
            out_shape=out_shape,
            grid_spec=pltpu.PrefetchScalarGridSpec(
                num_scalar_prefetch=0,
                grid=grid,
                in_specs=[
                    pl.BlockSpec((tr, w), lambda i: (i, 0)),
                    pl.BlockSpec((tr, w), lambda i: (i, 1)),
                ],
                out_specs=pl.BlockSpec((tr, w), lambda i: (i, 0)),
            ),
            compiler_params=compiler_params,
        )(x2, x2)

    # General path: W % 128 != 0 (masked stores / padded VMEM rows are accepted;
    # W % 128 == 0 is the documented fast path).
    return pl.pallas_call(
        _avgpool_rowpair_kernel,
        out_shape=out_shape,
        grid_spec=pltpu.PrefetchScalarGridSpec(
            num_scalar_prefetch=0,
            grid=grid,
            in_specs=[pl.BlockSpec((tr, 2 * w), lambda i: (i, 0))],
            out_specs=pl.BlockSpec((tr, w), lambda i: (i, 0)),
        ),
        compiler_params=compiler_params,
    )(x2)


# ------------------------------ Module wrapper ----------------------------- #
@jax.jit
def avgpool_layer_forward(x):
    """nn.AvgPool2d((2, 1)): (N, C, H, W) -> (N, C, H // 2, W)."""
    N, C, H, W = x.shape
    Ho = H // 2
    # PyTorch floors: trailing row is dropped when H is odd.  For even H this
    # slice is the identity (zero-copy).  For odd H XLA materializes a copy of
    # the input before the kernel; acceptable since odd H is a corner case.
    x = x[:, :, : 2 * Ho, :]
    # Zero-copy view: row r of x2 packs [input row 2r | input row 2r+1].
    x2 = x.reshape(N * C * Ho, 2 * W)
    out2 = _avgpool_pallas(x2, W)
    return out2.reshape(N, C, Ho, W)


# ---------------------------------- main ----------------------------------- #
if __name__ == "__main__":
    key = jax.random.PRNGKey(0)
    k1, k2 = jax.random.split(key)

    # Small NCHW input (exercises the general W % 128 != 0 path).
    N, C, H, W = 2, 4, 16, 16
    x = jax.random.normal(k1, (N, C, H, W), dtype=jnp.float32)
    out = jax.block_until_ready(avgpool_layer_forward(x))
    assert out.shape == (N, C, H // 2, W), out.shape
    ref = (x[:, :, 0::2, :] + x[:, :, 1::2, :]) * 0.5
    assert jnp.allclose(out, ref, atol=1e-6, rtol=1e-6)

    # Lane-dense fast path (W % 128 == 0): even/odd split done in the DMA.
    y = jax.random.normal(k2, (1, 2, 8, 128), dtype=jnp.float32)
    out_y = jax.block_until_ready(avgpool_layer_forward(y))
    ref_y = (y[:, :, 0::2, :] + y[:, :, 1::2, :]) * 0.5
    assert out_y.shape == ref_y.shape, out_y.shape
    assert jnp.allclose(out_y, ref_y, atol=1e-6, rtol=1e-6)

    print("KERNEL_OK")
</pallas_src>

<mosaic_0001>
module attributes {stable_mosaic.version = 11 : i64} {
  func.func @_avgpool_rowpair_kernel(%arg0: i32, %arg1: memref<16x32xf32, #tpu.memory_space<vmem>>, %arg2: memref<16x16xf32, #tpu.memory_space<vmem>>) attributes {dimension_semantics = [#tpu.dimension_semantics<parallel>], iteration_bounds = array<i64: 4>, scalar_prefetch = 0 : i64, scratch_operands = 0 : i64, tpu.core_type = #tpu.core_type<tc>, window_params = [{transform_indices = @transform_0, window_bounds = array<i64: 16, 32>}, {transform_indices = @transform_1, window_bounds = array<i64: 16, 16>}]} {
    %c0 = arith.constant 0 : index
    %c0_0 = arith.constant 0 : index
    %0 = vector.load %arg1[%c0, %c0_0] : memref<16x32xf32, #tpu.memory_space<vmem>>, vector<16x16xf32>
    %c0_1 = arith.constant 0 : index
    %c16 = arith.constant 16 : index
    %1 = vector.load %arg1[%c0_1, %c16] : memref<16x32xf32, #tpu.memory_space<vmem>>, vector<16x16xf32>
    %2 = arith.addf %0, %1 : vector<16x16xf32>
    %cst = arith.constant 5.000000e-01 : f32
    %3 = vector.broadcast %cst : f32 to vector<16x16xf32>
    %4 = arith.mulf %2, %3 : vector<16x16xf32>
    %c0_2 = arith.constant 0 : index
    %c0_3 = arith.constant 0 : index
    %5 = vector.load %arg2[%c0_2, %c0_3] : memref<16x16xf32, #tpu.memory_space<vmem>>, vector<16x16xf32>
    tpu.vector_store %arg2[%c0_2, %c0_3], %4 {strides = array<i32>} : memref<16x16xf32, #tpu.memory_space<vmem>>, vector<16x16xf32>,
    return
  }
  func.func @transform_0(%arg0: i32) -> (i32, i32) {
    %c0_i32 = arith.constant 0 : i32
    %c0_i32_0 = arith.constant 0 : i32
    return %arg0, %c0_i32 : i32, i32
  }
  func.func @transform_1(%arg0: i32) -> (i32, i32) {
    %c0_i32 = arith.constant 0 : i32
    %c0_i32_0 = arith.constant 0 : i32
    return %arg0, %c0_i32 : i32, i32
  }
}

</mosaic_0001>

<bundles_post_ra>
// kernel: avgpool_layer_forward.1
= control target key start
LH: loop header
LB: loop body
LE: loop exit
PB: predicated region body
PF: predicated region fallthrough
CT: control target
= control target key end

     0   :  { %6 = vsyncpa [#allocation3], 0  ;;  %s429_s0 = inlined_call_operand.vmem [shape: f32[64,32], index: 0, kind: input, shape index: {}]   ;;  %s430_s1 = inlined_call_operand.hbm [shape: f32[64,16], index: 1, kind: output, shape index: {}]  }
   0x1   :  { %8 = vsyncpa [#allocation3 + $0x1], 0  ;;  %s345_s6 = smov 0   ;;  %s347_s7 = smov 0  }
   0x2   :  { %s349_s8 = smov 0   ;;  %s351_s9 = smov 0  }
   0x3 LB: > { %s366_s10 = sadd.s32 4294967295, %s330_s9   ;;  %s213_s11 = sadd.s32 4294967294, %s330_s9   ;;  %s330_s9 = sphi %s351_s9, %s436_s9   ;;  %s326_s8 = sphi %s349_s8, %s435_s8   ;;  %s322_s7 = sphi %s347_s7, %s434_s7   ;;  %s318_s6 = sphi %s345_s6, %s433_s6  }
   0x4   : > { %s370_s12 = sadd.s32 1, %s330_s9   ;;  %s47_s13 = sadd.s32 1, %s326_s8 }
   0x5   : > { %s44_s14 = ssub.s32 %s330_s9, %s370_s12  ;;  %p57_p0 = scmp.ne.s32.totalorder %s326_s8, %s322_s7 }
   0x6   : > { %p45_p1 = scmp.eq.s32.totalorder %s44_s14, 0  ;;  %p58_p2 = scmp.eq.s32.totalorder %s366_s10, 3 }
   0x7   : > { %p63_p3 = scmp.ne.s32.totalorder %s322_s7, %s318_s6  ;;  %p64_p4 = scmp.eq.s32.totalorder %s213_s11, 3 }
   0x8   : > { %s381_s15 = scalar_select %p45_p1, %s326_s8, %s47_s13  }
   0x9   : > { %p383_p5 = por %p58_p2, %p57_p0  ;;  %p387_p6 = por %p64_p4, %p63_p3 }
   0xa   : > { %p216_p7 = scmp.ge.s32.totalorder %s330_s9, 1  ;;  %p91_p8 = scmp.lt.s32.totalorder %s330_s9, 5 }
   0xc   : > { %p92_p9 = pnand %p216_p7, %p91_p8 }
   0xd   : > { %s218_s18 = sshll.u32 (!%p92_p9), %s366_s10, 1  ;;  %s332_s23 = smov (!%p92_p9), 112  }
   0xe   : > { %95 = sbr.rel (%p92_p9) target bundleno = 154 (0x9a), region = 24  ;;  %p112_p10 = scmp.lt.s32.totalorder (!%p92_p9), %s218_s18, 7 }
   0xf   : > { %s108_s24 = sand.u32 (!%p92_p9), 1, %s322_s7   ;;  %s225_s26 = sshll.u32 (!%p92_p9), %s366_s10, 4 }
  0x10   : > { %s217_s25 = sshll.u32 (!%p92_p9), %s108_s24, 4  ;;  %s147_s30 = scalar_lea.hbm (!%p92_p9), %s430_s1, %s225_s26 }
  0x11   : > { %s110_s27 = scalar_lea.vmem (!%p92_p9), [#allocation2], %s217_s25  ;;  %s150_s3 = sshll.u32 (!%p92_p9), %s147_s30, 4  ;;  %s151_s3 = int_to_ptr.hbm [resolvable:$true] %s150_s3 }
  0x12   : > { %s148_s2 = sshll.u32 (!%p92_p9), %s110_s27, 4  ;;  %s136_s4 = scalar_lea.sflag (!%p92_p9), [#allocation3], %s108_s24  ;;  %s149_s2 = int_to_ptr.vmem [resolvable:$true] %s148_s2 }
  0x13   : > { %s438_s18 = smov (!%p112_p10, %s218_s18), 7  ;;  %vm132_vm0 = vcmask 130048   ;;  %s282_s5 = sshra.s32 %s151_s3, 4  ;;  %s283_s5 = int_to_ptr.hbm [resolvable:$true] %s282_s5 }
  0x14   : > { %s219_s19 = sshll.u32 %s438_s18, 3  ;;  %s284_s10 = scalar_lea.hbm %s283_s5, 16 }
  0x15   : > { %s115_s22 = scalar_lea.vmem %s429_s0, %s219_s19  ;;  %p285_p11 = scmp.ne.s32.totalorder %s283_s5, %s284_s10 }
  0x16   : > { %v118_v0 = vld [vmem:[%s115_s22] sm:$0xff]  ;;  %v119_v1 = vld [vmem:[%s115_s22 + $0x8] sm:$0xff]  ;;  %s288_s14 = scalar_lea.hbm %s430_s1, 64  ;;  %p289_p0 = scmp.lt.s32.totalorder %s283_s5, %s430_s1 }
  0x17   : > { %122 = vrot.lane.b32.xlu0 %v118_v0, %s332_s23  ;;  %p286_p12 = pnand %p285_p11, %p383_p5  ;;  %p290_p1 = scmp.lt.s32.totalorder %s288_s14, %s284_s10 }
  0x19   : > { %p287_p13 = pneg %p286_p12  ;;  %p291_p2 = por %p290_p1, %p289_p0 }
  0x1b   : > { %p292_p3 = pnand %p291_p2, %p287_p13 }
  0x1f   : > { %124 = vrot.lane.b32.xlu0 %v119_v1, %s332_s23 }
  0x89   : > { %v123_v2 = vpop.permute.xlu0 %122 }
  0x8a   : > { %v128_v3 = vadd.f32 %v123_v2, %v118_v0 }
  0x8c   : > { %v130_v4 = vmul.f32 0.5, %v128_v3 }
  0x8e   : > { %133 = vst.msk [vmem:[%s110_s27] sm:$0xff] %vm132_vm0, %v130_v4 }
  0x91   : > { %v125_v5 = vpop.permute.xlu0 %124 }
  0x92   : > { %v129_v6 = vadd.f32 %v125_v5, %v119_v1 }
  0x94   : > { %v131_v7 = vmul.f32 0.5, %v129_v6 }
  0x96   : > { %134 = vst.msk [vmem:[%s110_s27 + $0x8] sm:$0xff] %vm132_vm0, %v131_v7 }
  0x97   : > { %295 = shalt.err (!%p292_p3)
}
  0x98   : > { %s333_s20 = smov 128   ;;  %s334_s21 = smov 8  }
  0x99   : > { %226 = dma.vmem_to_hbm [thread:$0]  (%p383_p5), %s149_s2, 256, %s151_s3, %s136_s4, %s333_s20, %s333_s20, %s334_s21  }
  0x9a PF: > { %p232_p4 = scmp.ge.s32.totalorder %s330_s9, 2  ;;  %s165_s22 = sand.u32 1, %s318_s6  }
  0x9b   : > { %s166_s23 = scalar_lea.sflag [#allocation3], %s165_s22 }
  0x9c   : > { %p229_p7 = pnand %p232_p4, %p387_p6 }
  0x9e   : > { %p230_p8 = pneg %p229_p7 }
  0xa0   : > { %313 = dma.done.wait (%p230_p8), %s166_s23, 256  }
  0xa1   : > { %315 = vsyncadd (%p230_p8), %s166_s23, 4294967040  ;;  %p11_p9 = scmp.ge.s32.totalorder %s370_s12, 6   ;;  %s433_s6 = smov %s322_s7 }
  0xa2   : > { %s434_s7 = smov %s326_s8  ;;  %s435_s8 = smov %s381_s15 }
  0xa3   : > { %s436_s9 = smov %s370_s12  ;;  %13 = sbr.rel (!%p11_p9) target bundleno = 3 (0x3), region = 59 }
  0xa8   :  { %172 = vsyncpa [#allocation3], 1 }
  0xa9   :  { %174 = vsyncpa [#allocation3 + $0x1], 1 }

</bundles_post_ra>
